<compile_context>
chip_gen: v6e
topology: v6e:2x2x1
jax: 0.10.0
libtpu: 0.0.40
codegen_flags: <defaults>
</compile_context>

<pallas_src>
import functools
import math

import jax
import jax.numpy as jnp
from jax.experimental import pallas as pl
from jax.experimental.pallas import tpu as pltpu


_VMEM_BUDGET = 24 * 1024 * 1024      # stay under the 32 MiB scoped default everywhere
_TB_SINGLE_TILE_MAX = 512            # grow the row tile up to this to keep one B tile


def _round_up(x, mult):
    return ((x + mult - 1) // mult) * mult


# ---------------------------------------------------------------------------
# Kernel 1: L2-normalize rows of x (dim=1) -> bf16 MXU operand.
# ---------------------------------------------------------------------------
def _row_normalize_kernel(x_ref, o_ref):
    x = x_ref[...].astype(jnp.float32)                               # (tb, K)
    inv = jax.lax.rsqrt(jnp.maximum(jnp.sum(x * x, axis=1, keepdims=True), 1e-24))
    o_ref[...] = (x * inv).astype(o_ref.dtype)


def _normalize_rows(x, *, out_dtype=jnp.bfloat16):
    B, K = x.shape
    # Full-K blocks (exact norms); bound the row tile so double-buffered blocks fit VMEM.
    per_row = K * (x.dtype.itemsize + jnp.dtype(out_dtype).itemsize) * 2
    tb = min(B, max(8, (_VMEM_BUDGET // max(per_row, 1)) // 8 * 8))
    return pl.pallas_call(
        _row_normalize_kernel,
        out_shape=jax.ShapeDtypeStruct((B, K), out_dtype),
        grid=(pl.cdiv(B, tb),),
        in_specs=[pl.BlockSpec((tb, K), lambda i: (i, 0))],
        out_specs=pl.BlockSpec((tb, K), lambda i: (i, 0)),
        compiler_params=pltpu.CompilerParams(dimension_semantics=("parallel",)),
    )(x)


# ---------------------------------------------------------------------------
# Kernel 2 (large-batch path only): L2-normalize columns of W (dim=0) -> bf16.
# ---------------------------------------------------------------------------
def _col_normalize_kernel(w_ref, o_ref):
    w = w_ref[...].astype(jnp.float32)                               # (K, tn)
    inv = jax.lax.rsqrt(jnp.maximum(jnp.sum(w * w, axis=0, keepdims=True), 1e-24))
    o_ref[...] = (w * inv).astype(o_ref.dtype)


def _normalize_cols(w, *, out_dtype=jnp.bfloat16):
    K, N = w.shape
    per_col = K * (w.dtype.itemsize + jnp.dtype(out_dtype).itemsize) * 2
    if N < 128:
        tn = N
    else:
        tn = min((N // 128) * 128,
                 max(128, (_VMEM_BUDGET // max(per_col, 1)) // 128 * 128))
    # TODO(synk): for K > ~10k a column tile no longer fits VMEM; add a K-tiled
    # sum-of-squares pass here instead of relying on a raised vmem limit.
    return pl.pallas_call(
        _col_normalize_kernel,
        out_shape=jax.ShapeDtypeStruct((K, N), out_dtype),
        grid=(pl.cdiv(N, tn),),
        in_specs=[pl.BlockSpec((K, tn), lambda j: (0, j))],
        out_specs=pl.BlockSpec((K, tn), lambda j: (0, j)),
        compiler_params=pltpu.CompilerParams(dimension_semantics=("parallel",)),
    )(w)


# ---------------------------------------------------------------------------
# Kernel 3 (common path): fused column-norm + cosine matmul + ArcFace margin.
#   cosine = (xn_bf16 @ W_bf16) * rsqrt(sum(W^2, axis=0))     [norms in f32]
#   out    = s * (c*cos(m) - sqrt(1-c^2)*sin(m))
# Grid = (N tiles, K tiles); K is the last ("arbitrary") axis with f32 VMEM
# accumulators, so raw W streams through HBM exactly once.
# ---------------------------------------------------------------------------
def _arcface_fused_kernel(xn_ref, w_ref, o_ref, acc_ref, ssq_ref, *, s, cos_m, sin_m):
    k = pl.program_id(1)

    @pl.when(k == 0)
    def _():
        acc_ref[...] = jnp.zeros_like(acc_ref)
        ssq_ref[...] = jnp.zeros_like(ssq_ref)

    w = w_ref[...].astype(jnp.float32)                               # (tk, tn) raw W
    ssq_ref[...] += jnp.sum(w * w, axis=0, keepdims=True)            # VPU, hides under MXU
    acc_ref[...] += jnp.dot(xn_ref[...], w.astype(jnp.bfloat16),
                            preferred_element_type=jnp.float32)

    @pl.when(k == pl.num_programs(1) - 1)
    def _():
        inv_wn = jax.lax.rsqrt(jnp.maximum(ssq_ref[...], 1e-24))
        c = jnp.clip(acc_ref[...] * inv_wn, -1.0 + 1e-7, 1.0 - 1e-7)
        sin_t = jnp.sqrt(1.0 - c * c)
        o_ref[...] = (s * (c * cos_m - sin_t * sin_m)).astype(o_ref.dtype)


# ---------------------------------------------------------------------------
# Kernel 4 (large-batch path): cosine matmul on pre-normalized operands + margin.
# ---------------------------------------------------------------------------
def _arcface_matmul_kernel(xn_ref, wn_ref, o_ref, *, s, cos_m, sin_m):
    c = jnp.dot(xn_ref[...], wn_ref[...], preferred_element_type=jnp.float32)
    c = jnp.clip(c, -1.0 + 1e-7, 1.0 - 1e-7)
    sin_t = jnp.sqrt(1.0 - c * c)
    o_ref[...] = (s * (c * cos_m - sin_t * sin_m)).astype(o_ref.dtype)


# ---------------------------------------------------------------------------
# Tile selection helpers.
# ---------------------------------------------------------------------------
def _pick_tk(K, tk_max=2048):
    """K tile: full K if small; otherwise a multiple of 256 that divides K exactly
    (the reduction axis must never be ragged so norms / dots stay exact)."""
    if K <= tk_max:
        return K
    for cand in range(tk_max, 255, -256):
        if K % cand == 0:
            return cand
    return K        # no clean divisor: keep full K; VMEM budget shrinks tn instead


def _pick_tn(N, k_blk, tb, *, w_bytes, out_bytes, budget=_VMEM_BUDGET):
    """Largest lane-dense (multiple-of-128) class tile whose double-buffered
    footprint fits the VMEM budget."""
    if N < 128:
        return N
    cap = (N // 128) * 128
    for cand in (2048, 1536, 1024, 768, 512, 384, 256, 128):
        tn = min(cand, cap)
        footprint = (2 * tb * k_blk * 2          # xn bf16 block, double-buffered
                     + 2 * k_blk * tn * w_bytes  # W / wn block, double-buffered
                     + 2 * tb * tn * out_bytes   # output block, double-buffered
                     + tb * tn * 4               # f32 accumulator scratch
                     + 8 * tn * 4)               # ssq scratch (sublane padded)
        if footprint <= budget:
            return tn
    return min(128, cap)


def _fused_footprint(tb, tn, tk, out_bytes):
    return (2 * tb * tk * 2 + 2 * tk * tn * 4
            + 2 * tb * tn * out_bytes + tb * tn * 4 + 8 * tn * 4)


# ---------------------------------------------------------------------------
# Public forward.
# ---------------------------------------------------------------------------
def arcface_forward(x, w, s, m, *, out_dtype=jnp.float32):
    B, K = x.shape
    kw, N = w.shape
    assert K == kw, "x / W inner-dim mismatch"

    s = float(s)
    cos_m, sin_m = math.cos(float(m)), math.sin(float(m))
    out_bytes = jnp.dtype(out_dtype).itemsize

    # L2-normalize x rows once (x is the small operand; never redone per tile).
    xn = _normalize_rows(x)

    if B <= _TB_SINGLE_TILE_MAX:
        # --- Fused path (common ArcFace case: a single row tile) ----------------
        tb = B
        tk = _pick_tk(K)
        tn = _pick_tn(N, tk, tb, w_bytes=4, out_bytes=out_bytes)
        n_tiles = pl.cdiv(N, tn)
        k_tiles = pl.cdiv(K, tk)          # tk always divides K exactly (see _pick_tk)

        cp_kwargs = dict(dimension_semantics=("parallel", "arbitrary"))
        footprint = _fused_footprint(tb, tn, tk, out_bytes)
        if footprint > _VMEM_BUDGET:
            cp_kwargs["vmem_limit_bytes"] = int(footprint) + (8 << 20)

        kernel = functools.partial(_arcface_fused_kernel, s=s, cos_m=cos_m, sin_m=sin_m)
        cost = pl.CostEstimate(
            flops=2 * B * N * K,
            bytes_accessed=4 * K * N + 2 * B * K + out_bytes * B * N,
            transcendentals=0,
        )
        return pl.pallas_call(
            kernel,
            out_shape=jax.ShapeDtypeStruct((B, N), out_dtype),
            grid=(n_tiles, k_tiles),
            in_specs=[
                pl.BlockSpec((tb, tk), lambda j, k: (0, k)),   # xn: tiny, re-read per j
                pl.BlockSpec((tk, tn), lambda j, k: (k, j)),   # raw f32 W: streamed once
            ],
            out_specs=pl.BlockSpec((tb, tn), lambda j, k: (0, j)),
            scratch_shapes=[
                pltpu.VMEM((tb, tn), jnp.float32),             # dot accumulator
                pltpu.VMEM((1, tn), jnp.float32),              # per-column sum(W^2)
            ],
            compiler_params=pltpu.CompilerParams(**cp_kwargs),
            cost_estimate=cost,
        )(xn, w)

    # --- Large-batch path: pre-normalize W once, stream it once (N outer) -------
    wn = _normalize_cols(w)
    tb = 256
    tn = _pick_tn(N, K, tb, w_bytes=2, out_bytes=out_bytes)

    cp_kwargs = dict(dimension_semantics=("parallel", "parallel"))
    footprint = 2 * tb * K * 2 + 2 * K * tn * 2 + 2 * tb * tn * out_bytes
    if footprint > _VMEM_BUDGET:
        cp_kwargs["vmem_limit_bytes"] = int(footprint) + (8 << 20)

    kernel = functools.partial(_arcface_matmul_kernel, s=s, cos_m=cos_m, sin_m=sin_m)
    cost = pl.CostEstimate(
        flops=2 * B * N * K,
        bytes_accessed=2 * K * N + 2 * B * K + out_bytes * B * N,
        transcendentals=0,
    )
    # TODO(synk): very large B AND very large K simultaneously would additionally
    # need a K grid axis ("arbitrary", last) with an f32 accumulator here.
    return pl.pallas_call(
        kernel,
        out_shape=jax.ShapeDtypeStruct((B, N), out_dtype),
        grid=(pl.cdiv(N, tn), pl.cdiv(B, tb)),                 # N outer: wn streamed once
        in_specs=[
            pl.BlockSpec((tb, K), lambda j, i: (i, 0)),        # xn: small, re-read per j
            pl.BlockSpec((K, tn), lambda j, i: (0, j)),        # wn: constant over inner i
        ],
        out_specs=pl.BlockSpec((tb, tn), lambda j, i: (i, j)),
        compiler_params=pltpu.CompilerParams(**cp_kwargs),
        cost_estimate=cost,
    )(xn, wn)


def kaiming_uniform_init(key, in_dim, out_dim):
    # nn.init.kaiming_uniform_ (a=0, fan_in = W.size(1) = out_dim for a 2-D tensor)
    gain = math.sqrt(2.0)
    bound = gain * math.sqrt(3.0 / out_dim)
    return jax.random.uniform(
        key, (in_dim, out_dim), dtype=jnp.float32, minval=-bound, maxval=bound
    )


if __name__ == "__main__":
    key = jax.random.PRNGKey(0)
    kx, kw = jax.random.split(key)

    B, in_dim, out_dim = 8, 32, 16
    s, m = 30.0, 0.5

    x = jax.random.normal(kx, (B, in_dim), dtype=jnp.float32)
    W = kaiming_uniform_init(kw, in_dim, out_dim)

    out = arcface_forward(x, W, s, m)
    jax.block_until_ready(out)

    # (a) reference mirroring the kernel's precision (bf16 MXU operands, f32
    #     accumulate, f32 norms applied as a post-matmul scale) -> tight check.
    xn_k = (x * jax.lax.rsqrt(
        jnp.maximum(jnp.sum(x * x, axis=1, keepdims=True), 1e-24))).astype(jnp.bfloat16)
    inv_w = jax.lax.rsqrt(jnp.maximum(jnp.sum(W * W, axis=0, keepdims=True), 1e-24))
    c_bf = jnp.dot(xn_k, W.astype(jnp.bfloat16),
                   preferred_element_type=jnp.float32) * inv_w
    c_bf = jnp.clip(c_bf, -1.0 + 1e-7, 1.0 - 1e-7)
    ref_tight = s * jnp.cos(jnp.arccos(c_bf) + m)
    assert jnp.allclose(out, ref_tight, atol=5e-2, rtol=1e-2), \
        "mismatch vs bf16-matched reference"

    # (b) full-f32 module math -> loose check (bf16 MXU operand rounding).
    xn_ref = x / jnp.maximum(jnp.linalg.norm(x, axis=1, keepdims=True), 1e-12)
    wn_ref = W / jnp.maximum(jnp.linalg.norm(W, axis=0, keepdims=True), 1e-12)
    c_f32 = jnp.clip(xn_ref @ wn_ref, -1.0 + 1e-7, 1.0 - 1e-7)
    ref_f32 = s * jnp.cos(jnp.arccos(c_f32) + m)
    assert jnp.allclose(out, ref_f32, atol=5e-1, rtol=5e-2), "mismatch vs f32 reference"

    print("KERNEL_OK")
</pallas_src>

<mosaic_0001>
module attributes {stable_mosaic.version = 11 : i64} {
  func.func @_row_normalize_kernel(%arg0: i32, %arg1: memref<8x32xf32, #tpu.memory_space<vmem>>, %arg2: memref<8x32xbf16, #tpu.memory_space<vmem>>) attributes {dimension_semantics = [#tpu.dimension_semantics<parallel>], iteration_bounds = array<i64: 1>, scalar_prefetch = 0 : i64, scratch_operands = 0 : i64, tpu.core_type = #tpu.core_type<tc>, window_params = [{transform_indices = @transform_0, window_bounds = array<i64: 8, 32>}, {transform_indices = @transform_1, window_bounds = array<i64: 8, 32>}]} {
    %c0 = arith.constant 0 : index
    %c0_0 = arith.constant 0 : index
    %0 = vector.load %arg1[%c0, %c0_0] : memref<8x32xf32, #tpu.memory_space<vmem>>, vector<8x32xf32>
    %1 = arith.mulf %0, %0 : vector<8x32xf32>
    %cst = arith.constant dense<0.000000e+00> : vector<8xf32>
    %2 = vector.multi_reduction <add>, %1, %cst [1] : vector<8x32xf32> to vector<8xf32>
    %3 = vector.shape_cast %2 : vector<8xf32> to vector<8x1xf32>
    %cst_1 = arith.constant 1.000000e-24 : f32
    %4 = vector.broadcast %cst_1 : f32 to vector<8x1xf32>
    %5 = arith.maximumf %3, %4 : vector<8x1xf32>
    %6 = math.rsqrt %5 : vector<8x1xf32>
    %7 = vector.broadcast %6 : vector<8x1xf32> to vector<8x32xf32>
    %8 = arith.mulf %0, %7 : vector<8x32xf32>
    %9 = arith.truncf %8 : vector<8x32xf32> to vector<8x32xbf16>
    %c0_2 = arith.constant 0 : index
    %c0_3 = arith.constant 0 : index
    %10 = vector.load %arg2[%c0_2, %c0_3] : memref<8x32xbf16, #tpu.memory_space<vmem>>, vector<8x32xbf16>
    tpu.vector_store %arg2[%c0_2, %c0_3], %9 {strides = array<i32>} : memref<8x32xbf16, #tpu.memory_space<vmem>>, vector<8x32xbf16>,
    return
  }
  func.func @transform_0(%arg0: i32) -> (i32, i32) {
    %c0_i32 = arith.constant 0 : i32
    %c0_i32_0 = arith.constant 0 : i32
    return %arg0, %c0_i32 : i32, i32
  }
  func.func @transform_1(%arg0: i32) -> (i32, i32) {
    %c0_i32 = arith.constant 0 : i32
    %c0_i32_0 = arith.constant 0 : i32
    return %arg0, %c0_i32 : i32, i32
  }
}

</mosaic_0001>

<bundles_post_ra>
// kernel: tpu_custom_call.1
= control target key start
LH: loop header
LB: loop body
LE: loop exit
PB: predicated region body
PF: predicated region fallthrough
CT: control target
= control target key end

     0   :  { %6 = vsyncpa [#allocation3], 0  ;;  %s114_s0 = inlined_call_operand.hbm [shape: f32[8,32], index: 0, kind: input, shape index: {}]   ;;  %s115_s1 = inlined_call_operand.hbm [shape: bf16[8,32], index: 1, kind: output, shape index: {}]  }
   0x1   :  { %7 = vsyncpa [#allocation4], 0  ;;  %s96_s6 = smov [#allocation2]  }
   0x2   :  { %s14_s7 = sshll.u32 %s96_s6, 4  ;;  %s15_s7 = int_to_ptr.vmem [resolvable:$true] %s14_s7 }
   0x3   :  { %s60_s8 = scalar_lea.vmem %s15_s7, 128  ;;  %p65_p1 = scmp.lt.s32.totalorder %s15_s7, %s15_s7 }
   0x4   :  { %p61_p0 = scmp.ne.s32.totalorder %s15_s7, %s60_s8  ;;  %p66_p2 = scmp.lt.s32.totalorder %s60_s8, %s60_s8 }
   0x6   :  { %p67_p3 = por %p66_p2, %p65_p1 }
   0x8   :  { %p68_p4 = pnand %p67_p3, %p61_p0 }
   0xa   :  { %71 = shalt.err (!%p68_p4)
}
   0xb   :  { %17 = dma.hbm_to_vmem [thread:$0]  %s114_s0, 128, %s15_s7, [#allocation3]  }
   0xc   :  { %92 = dma.done.wait [#allocation3], 128  }
   0xd   :  { %93 = vsyncadd [#allocation3], 4294967168  ;;  %v21_v0 = vld [vmem:[#allocation2] sm:$0xff]  ;;  %vm23_vm0 = vcmask 261120   ;;  %s97_s11 = smov [#allocation5]   ;;  %vm31_vm1 = vcmask 257024  }
   0xe   :  { %v22_v1 = vmul.f32 %v21_v0, %v21_v0  ;;  %s39_s12 = sshll.u32 %s97_s11, 4  ;;  %s40_s12 = int_to_ptr.vmem [resolvable:$true] %s39_s12 }
   0xf   :  { %s72_s13 = scalar_lea.vmem %s40_s12, 64  ;;  %p77_p6 = scmp.lt.s32.totalorder %s40_s12, %s40_s12 }
  0x10   :  { %v24_v2 = vsel %vm23_vm0, %v22_v1, 0.0  ;;  %p73_p5 = scmp.ne.s32.totalorder %s40_s12, %s72_s13  ;;  %p78_p7 = scmp.lt.s32.totalorder %s72_s13, %s72_s13 }
  0x11   :  { %25 = vadd.xlane.f32.xlu0 %v24_v2 }
  0x12   :  { %p79_p8 = por %p78_p7, %p77_p6 }
  0x14   :  { %p80_p9 = pnand %p79_p8, %p73_p5 }
  0x9a   :  { %v26_v3 = vpop.xlane.xlu0 %25 }
  0x9b   :  { %v27_v4 = vmax.f32 %v26_v3, 1e-24 }
  0x9d   :  { %50 = vrsqrt.f32 %v27_v4 }
  0xaa   :  { %v51_v5 = vpop.eup %50 }
  0xab   :  { %v29_v6 = vmul.f32 %v51_v5, %v21_v0 }
  0xad   :  { %v30_v7 = vpack.c.bf16 %v29_v6, %v29_v6 }
  0xaf   :  { %32 = vst.msk [vmem:[#allocation5] sm:$0xf] %vm31_vm1, %v30_v7 }
  0xb0   :  { %83 = shalt.err (!%p80_p9)
}
  0xb1   :  { %42 = dma.vmem_to_hbm [thread:$0]  %s40_s12, 64, %s115_s1, [#allocation4]  }
  0xb2   :  { %94 = dma.done.wait [#allocation4], 64  }
  0xb3   :  { %95 = vsyncadd [#allocation4], 4294967232 }
  0xb4   :  { %46 = vsyncpa [#allocation3], 1 }
  0xb5   :  { %47 = vsyncpa [#allocation4], 1 }

</bundles_post_ra>
